<compile_context>
chip_gen: v6e
topology: v6e:2x2x1
jax: 0.10.0
libtpu: 0.0.40
codegen_flags: <defaults>
</compile_context>

<pallas_src>
import math

import jax
import jax.numpy as jnp
from jax import lax
from jax.experimental import pallas as pl
from jax.experimental.pallas import tpu as pltpu


def _round_up(x, m):
    return ((x + m - 1) // m) * m


# ---------------------------------------------------------------------------
# Per-generation tuning (block caps / VMEM limits).
# ---------------------------------------------------------------------------
def _arch_config():
    try:
        kind = jax.devices()[0].device_kind.lower()
    except Exception:
        kind = ""
    if ("v5" in kind) or ("v6" in kind):
        # 128 MiB physical VMEM, single TensorCore: big batch tiles.
        return dict(block_cap=256, vmem_limit=64 * 1024 * 1024)
    # v7x (64 MiB VMEM, 2 TCs) and unknown chips: conservative tiles.
    return dict(block_cap=128, vmem_limit=32 * 1024 * 1024)


def _const_spec(shape, buffered):
    """BlockSpec for a loop-invariant (constant index_map) operand."""
    nd = len(shape)
    idx = lambda i: (0,) * nd
    if buffered:
        return pl.BlockSpec(shape, idx, pipeline_mode=pl.Buffered(1))
    return pl.BlockSpec(shape, idx)


def _run_with_weight_buffering(build_and_run):
    """Run with single-buffered constant operands; fall back if unsupported."""
    try:
        out = build_and_run(True)
        jax.block_until_ready(out)
        return out
    except Exception:
        return build_and_run(False)


# ---------------------------------------------------------------------------
# Kernel 1: batched node merge (masked mean) as one MXU matmul, tiled over
# node-row blocks.
#   nid_ref (block_m, R)  int32 VMEM, -1 padded, *global* row indices into emb
#   emb_ref (Np, Hp)      bf16  VMEM (zero padded, resident across the grid)
#   out_ref (block_m, Hp) f32   VMEM
# ---------------------------------------------------------------------------
def _merge_kernel(nid_ref, emb_ref, out_ref):
    block_m, max_rows = nid_ref.shape
    n_emb = emb_ref.shape[0]
    idx = nid_ref[...]
    col = lax.broadcasted_iota(jnp.int32, (block_m, n_emb), 1)
    onehot = jnp.zeros((block_m, n_emb), jnp.float32)
    cnt = jnp.zeros((block_m, 1), jnp.float32)
    for k in range(max_rows):                                  # static, small
        idx_k = idx[:, k:k + 1]                                # (block_m, 1)
        valid = idx_k >= 0
        onehot = onehot + jnp.where((col == idx_k) & valid, 1.0, 0.0)
        cnt = cnt + valid.astype(jnp.float32)
    # one-hot is exactly representable in bf16; emb is already bf16.
    summed = jnp.dot(onehot.astype(jnp.bfloat16), emb_ref[...],
                     preferred_element_type=jnp.float32)
    # guard cnt==0 (original PyTorch would NaN there; never hit in valid inputs)
    out_ref[...] = summed / jnp.maximum(cnt, 1.0)


def merge_all_nodes(instance_embs, nid2rows_list, n_instances, h_pad):
    """Masked-mean merge for the whole minibatch in a single pallas_call.

    Returns (total_nodes, h_pad) f32 node embeddings (hidden dim zero-padded)
    plus the per-example node offsets into that table."""
    h_dim = int(instance_embs.shape[-1])
    n_tot = int(instance_embs.shape[0])
    n_pad = _round_up(n_tot, 128)

    max_rows = max(int(n.shape[1]) for n in nid2rows_list)
    rows, node_offsets = [], []
    node_off, row_start = 0, 0
    for i, nid in enumerate(nid2rows_list):
        nid = jnp.asarray(nid, jnp.int32)
        num_nodes_i, r_i = nid.shape
        nid_g = jnp.where(nid >= 0, nid + row_start, -1)       # offset into full table
        if r_i < max_rows:
            nid_g = jnp.concatenate(
                [nid_g, -jnp.ones((num_nodes_i, max_rows - r_i), jnp.int32)],
                axis=1)
        rows.append(nid_g)
        node_offsets.append(node_off)
        node_off += int(num_nodes_i)
        row_start += int(n_instances[i])
    nid_global = jnp.concatenate(rows, axis=0)
    tot_nodes = node_off

    block_m = min(256, _round_up(tot_nodes, 8))
    m_pad = _round_up(tot_nodes, block_m)
    if m_pad > tot_nodes:
        nid_global = jnp.concatenate(
            [nid_global, -jnp.ones((m_pad - tot_nodes, max_rows), jnp.int32)],
            axis=0)

    emb_pad = jnp.zeros((n_pad, h_pad), jnp.bfloat16)
    emb_pad = emb_pad.at[:n_tot, :h_dim].set(instance_embs.astype(jnp.bfloat16))

    cfg = _arch_config()

    def run(buffered):
        return pl.pallas_call(
            _merge_kernel,
            out_shape=jax.ShapeDtypeStruct((m_pad, h_pad), jnp.float32),
            grid=(m_pad // block_m,),
            in_specs=[pl.BlockSpec((block_m, max_rows), lambda i: (i, 0)),
                      _const_spec((n_pad, h_pad), buffered)],
            out_specs=pl.BlockSpec((block_m, h_pad), lambda i: (i, 0)),
            compiler_params=pltpu.CompilerParams(
                dimension_semantics=("parallel",),
                vmem_limit_bytes=cfg["vmem_limit"]),
        )(nid_global, emb_pad)

    node_embs = _run_with_weight_buffering(run)
    return node_embs[:tot_nodes], node_offsets


# ---------------------------------------------------------------------------
# Kernel 2: single-layer LSTM, time-major input, hoisted input projection.
# Gate order (after wrapper re-pack): i, f, o, g — each block h_pad wide, so
# one sigmoid covers 3*h_pad lanes and one tanh covers h_pad lanes.
# Matmul operands are bf16; h/c state and gate math stay f32.
# ---------------------------------------------------------------------------
def _lstm_cell_step(gx_t, whh_ref, h_scr, c_scr, hp):
    gates = gx_t + jnp.dot(h_scr[...].astype(jnp.bfloat16), whh_ref[...],
                           preferred_element_type=jnp.float32)
    sig = jax.nn.sigmoid(gates[:, :3 * hp])        # one EUP pass for i, f, o
    i_g = sig[:, 0 * hp:1 * hp]
    f_g = sig[:, 1 * hp:2 * hp]
    o_g = sig[:, 2 * hp:3 * hp]
    g_g = jnp.tanh(gates[:, 3 * hp:])
    c_t = f_g * c_scr[...] + i_g * g_g
    h_t = o_g * jnp.tanh(c_t)
    h_scr[...] = h_t
    c_scr[...] = c_t
    return h_t


def _lstm_proj_and_init(x_ref, wih_ref, b_ref, gx_scr, h_scr, c_scr):
    t_steps, tb, hp = x_ref.shape
    # Hoisted input projection, bias folded in (one well-shaped bf16 matmul).
    gx = jnp.dot(x_ref[...].reshape(t_steps * tb, hp), wih_ref[...],
                 preferred_element_type=jnp.float32) + b_ref[...]
    gx_scr[...] = gx.reshape(t_steps, tb, 4 * hp)
    h_scr[...] = jnp.zeros(h_scr.shape, h_scr.dtype)
    c_scr[...] = jnp.zeros(c_scr.shape, c_scr.dtype)


def _lstm_seq_kernel(x_ref, wih_ref, whh_ref, b_ref, out_ref,
                     gx_scr, h_scr, c_scr):
    t_steps, tb, hp = x_ref.shape
    _lstm_proj_and_init(x_ref, wih_ref, b_ref, gx_scr, h_scr, c_scr)
    # Fully unrolled static time loop; output written batch-major so no XLA
    # transpose is needed after the kernel (stores stay 128-lane dense).
    for t in range(t_steps):
        h_t = _lstm_cell_step(gx_scr[t], whh_ref, h_scr, c_scr, hp)
        out_ref[:, t, :] = h_t


def _lstm_score_kernel(x_ref, wih_ref, whh_ref, b_ref, ow_ref, ob_ref, out_ref,
                       gx_scr, h_scr, c_scr):
    t_steps, tb, hp = x_ref.shape
    _lstm_proj_and_init(x_ref, wih_ref, b_ref, gx_scr, h_scr, c_scr)
    h_e = jnp.zeros((tb, hp), jnp.float32)
    h_t = h_e
    for t in range(t_steps):
        h_t = _lstm_cell_step(gx_scr[t], whh_ref, h_scr, c_scr, hp)
        if t == t_steps - 2:
            h_e = h_t                              # h_{T-2}
    h_c = h_t                                      # h_{T-1}
    # Fused scoring head: VPU multiply + lane reduce (no N=1 MXU matmul, no
    # rnn_out writeback to HBM).
    logits = (jnp.sum(h_e * ow_ref[0:1, :], axis=-1, keepdims=True)
              + jnp.sum(h_c * ow_ref[1:2, :], axis=-1, keepdims=True)
              + ob_ref[...])
    out_ref[...] = jax.nn.sigmoid(logits)


# ---------------------------------------------------------------------------
# Wrappers: weight re-packing (transpose, gate reorder, zero pad, bf16 cast) +
# pallas_call with per-generation batch tiling.
# ---------------------------------------------------------------------------
def _pad_lstm_params(w_ih, w_hh, b_ih, b_hh, h_pad):
    """PyTorch (4H, H) gate weights (order i,f,g,o) -> (Hp, 4Hp) pre-transposed
    bf16, column order i,f,o,g, zero padded.  Bias stays f32."""
    h = w_ih.shape[1]

    def prep_w(w):
        blocks = [w[0:h], w[h:2 * h], w[3 * h:4 * h], w[2 * h:3 * h]]   # i,f,o,g
        out = jnp.zeros((h_pad, 4 * h_pad), jnp.float32)
        for k, blk in enumerate(blocks):
            out = out.at[:h, k * h_pad:k * h_pad + h].set(blk.T.astype(jnp.float32))
        return out.astype(jnp.bfloat16)

    b = (b_ih + b_hh).astype(jnp.float32)
    b_blocks = [b[0:h], b[h:2 * h], b[3 * h:4 * h], b[2 * h:3 * h]]
    b_out = jnp.zeros((1, 4 * h_pad), jnp.float32)
    for k, blk in enumerate(b_blocks):
        b_out = b_out.at[0, k * h_pad:k * h_pad + h].set(blk)
    return prep_w(w_ih), prep_w(w_hh), b_out


def _pad_score_params(out_w, out_b, h_dim, h_pad):
    ow = jnp.zeros((2, h_pad), jnp.float32)
    ow = ow.at[0, :h_dim].set(out_w[0, :h_dim].astype(jnp.float32))
    ow = ow.at[1, :h_dim].set(out_w[0, h_dim:2 * h_dim].astype(jnp.float32))
    return ow, out_b.reshape(1, 1).astype(jnp.float32)


def prepare_params(params, h_dim):
    """One-time weight prep (hoisted out of the per-call forward)."""
    h_pad = _round_up(h_dim, 128)
    wih_p, whh_p, b_p = _pad_lstm_params(params['w_ih'], params['w_hh'],
                                         params['b_ih'], params['b_hh'], h_pad)
    ow_p, ob_p = _pad_score_params(params['out_w'], params['out_b'],
                                   h_dim, h_pad)
    return dict(h_dim=h_dim, h_pad=h_pad, wih=wih_p, whh=whh_p, b=b_p,
                ow=ow_p, ob=ob_p)


def _pad_batch(x_tm, block_cap):
    """Zero-pad the batch and pick block_b so the grid has >= 2 steps whenever
    possible (pipelining, and both v7x TensorCores get work)."""
    t_steps, b, h_pad = x_tm.shape
    bp0 = _round_up(b, 8)
    if bp0 >= 16:
        block_b = max(8, min(block_cap, _round_up(bp0 // 2, 8)))
    else:
        block_b = bp0
    bp = _round_up(bp0, block_b)
    if bp > b:
        x_tm = jnp.concatenate(
            [x_tm, jnp.zeros((t_steps, bp - b, h_pad), x_tm.dtype)], axis=1)
    return x_tm, bp, block_b


def lstm_seq_forward(x_tm, wih_p, whh_p, b_p):
    """x_tm: (T, B, Hp) time-major bf16.  Returns (B, T, Hp) f32."""
    t_steps, b_real, h_pad = x_tm.shape
    cfg = _arch_config()
    x_pad, bp, block_b = _pad_batch(x_tm, cfg["block_cap"])

    def run(buffered):
        return pl.pallas_call(
            _lstm_seq_kernel,
            out_shape=jax.ShapeDtypeStruct((bp, t_steps, h_pad), jnp.float32),
            grid=(bp // block_b,),
            in_specs=[pl.BlockSpec((t_steps, block_b, h_pad), lambda i: (0, i, 0)),
                      _const_spec((h_pad, 4 * h_pad), buffered),
                      _const_spec((h_pad, 4 * h_pad), buffered),
                      _const_spec((1, 4 * h_pad), buffered)],
            out_specs=pl.BlockSpec((block_b, t_steps, h_pad), lambda i: (i, 0, 0)),
            scratch_shapes=[pltpu.VMEM((t_steps, block_b, 4 * h_pad), jnp.float32),
                            pltpu.VMEM((block_b, h_pad), jnp.float32),
                            pltpu.VMEM((block_b, h_pad), jnp.float32)],
            compiler_params=pltpu.CompilerParams(
                dimension_semantics=("parallel",),
                vmem_limit_bytes=cfg["vmem_limit"]),
        )(x_pad, wih_p, whh_p, b_p)

    out = _run_with_weight_buffering(run)
    return out[:b_real]


def lstm_scores_forward(x_tm, wih_p, whh_p, b_p, ow_p, ob_p):
    """Fused LSTM + scoring head.  x_tm: (T, B, Hp) bf16.  Returns (B,) f32."""
    t_steps, b_real, h_pad = x_tm.shape
    assert t_steps >= 2, "scoring head needs at least 2 time steps"
    cfg = _arch_config()
    x_pad, bp, block_b = _pad_batch(x_tm, cfg["block_cap"])

    def run(buffered):
        return pl.pallas_call(
            _lstm_score_kernel,
            out_shape=jax.ShapeDtypeStruct((bp, 1), jnp.float32),
            grid=(bp // block_b,),
            in_specs=[pl.BlockSpec((t_steps, block_b, h_pad), lambda i: (0, i, 0)),
                      _const_spec((h_pad, 4 * h_pad), buffered),
                      _const_spec((h_pad, 4 * h_pad), buffered),
                      _const_spec((1, 4 * h_pad), buffered),
                      _const_spec((2, h_pad), buffered),
                      _const_spec((1, 1), buffered)],
            out_specs=pl.BlockSpec((block_b, 1), lambda i: (i, 0)),
            scratch_shapes=[pltpu.VMEM((t_steps, block_b, 4 * h_pad), jnp.float32),
                            pltpu.VMEM((block_b, h_pad), jnp.float32),
                            pltpu.VMEM((block_b, h_pad), jnp.float32)],
            compiler_params=pltpu.CompilerParams(
                dimension_semantics=("parallel",),
                vmem_limit_bytes=cfg["vmem_limit"]),
        )(x_pad, wih_p, whh_p, b_p, ow_p, ob_p)

    scores = _run_with_weight_buffering(run)
    return scores[:b_real, 0]


# ---------------------------------------------------------------------------
# Parameter init (shapes from BertEventLSTM.__init__, PyTorch defaults)
# ---------------------------------------------------------------------------
def init_params(key, h_dim):
    k1, k2, k3, k4, k5, k6 = jax.random.split(key, 6)
    bound = 1.0 / math.sqrt(h_dim)
    w_ih = jax.random.uniform(k1, (4 * h_dim, h_dim), jnp.float32, -bound, bound)
    w_hh = jax.random.uniform(k2, (4 * h_dim, h_dim), jnp.float32, -bound, bound)
    b_ih = jax.random.uniform(k3, (4 * h_dim,), jnp.float32, -bound, bound)
    b_hh = jax.random.uniform(k4, (4 * h_dim,), jnp.float32, -bound, bound)
    xav = math.sqrt(6.0 / (2 * h_dim + 1))            # xavier_uniform, gain=1
    out_w = jax.random.uniform(k5, (1, 2 * h_dim), jnp.float32, -xav, xav)
    lin_b = 1.0 / math.sqrt(2 * h_dim)
    out_b = jax.random.uniform(k6, (1,), jnp.float32, -lin_b, lin_b)
    return dict(w_ih=w_ih, w_hh=w_hh, b_ih=b_ih, b_hh=b_hh,
                out_w=out_w, out_b=out_b)


# ---------------------------------------------------------------------------
# Optimized forward (Pallas path)
# ---------------------------------------------------------------------------
def bert_event_lstm_forward(prepped, instance_embs, nid2rows, coref_nids,
                            neg_coref_nids, n_instances, mode='embeddings'):
    batch_size = len(nid2rows)
    n_choices = int(neg_coref_nids[0].shape[0]) + 1
    h_dim = prepped['h_dim']
    h_pad = prepped['h_pad']

    # single batched merge over the whole minibatch
    node_embs, node_offsets = merge_all_nodes(instance_embs, nid2rows,
                                              n_instances, h_pad)

    idx_list = []
    for i in range(batch_size):
        cn = jnp.asarray(coref_nids[i], jnp.int32)
        neg = jnp.asarray(neg_coref_nids[i], jnp.int32)
        ctx_len = cn.shape[0] - 1
        context = jnp.broadcast_to(cn[:-1].reshape(1, -1), (n_choices, ctx_len))
        choices = jnp.concatenate((cn[-1].reshape(-1), neg), axis=0).reshape(-1, 1)
        idx_list.append(jnp.concatenate((context, choices), axis=1)
                        + node_offsets[i])
    idx_all = jnp.concatenate(idx_list, axis=0)            # (batch*n_choices, T)

    # gather LSTM inputs directly in time-major order (no activation transpose)
    # TODO(synk): fold this gather into the LSTM pallas_call (scalar-prefetched
    # idx + node_embs in pl.ANY with per-block row DMAs) to avoid the x_tm
    # HBM materialization entirely.
    x_tm = jnp.take(node_embs, idx_all.T, axis=0).astype(jnp.bfloat16)

    if mode == 'embeddings':
        rnn_out = lstm_seq_forward(x_tm, prepped['wih'], prepped['whh'],
                                   prepped['b'])          # (B, T, Hp)
        return rnn_out[:, :, :h_dim]

    scores = lstm_scores_forward(x_tm, prepped['wih'], prepped['whh'],
                                 prepped['b'], prepped['ow'], prepped['ob'])
    ys = jnp.zeros(scores.shape, jnp.float32).at[::n_choices].set(1.0)
    return scores, ys


# ---------------------------------------------------------------------------
# Pure-JAX reference (mirrors the PyTorch module structure, f32 throughout)
# ---------------------------------------------------------------------------
def _ref_merge(embeddings, nid2rows):
    outs = []
    for nid in range(nid2rows.shape[0]):
        idxs = nid2rows[nid]
        mask = (idxs >= 0)
        sel = embeddings[jnp.where(mask, idxs, 0)]
        outs.append(jnp.sum(sel * mask[:, None], axis=0) / jnp.sum(mask))
    return jnp.stack(outs, axis=0)


def _ref_lstm(x, w_ih, w_hh, b_ih, b_hh):
    B, T, H = x.shape
    h = jnp.zeros((B, H), jnp.float32)
    c = jnp.zeros((B, H), jnp.float32)
    outs = []
    for t in range(T):
        gates = x[:, t, :] @ w_ih.T + b_ih + h @ w_hh.T + b_hh
        i = jax.nn.sigmoid(gates[:, :H])
        f = jax.nn.sigmoid(gates[:, H:2 * H])
        g = jnp.tanh(gates[:, 2 * H:3 * H])
        o = jax.nn.sigmoid(gates[:, 3 * H:])
        c = f * c + i * g
        h = o * jnp.tanh(c)
        outs.append(h)
    return jnp.stack(outs, axis=1)


def _ref_score(h, out_w, out_b):
    return jax.nn.sigmoid(h @ out_w.T + out_b).reshape(-1)


def reference_forward(params, instance_embs, nid2rows, coref_nids,
                      neg_coref_nids, n_instances, mode='embeddings'):
    batch_size = len(nid2rows)
    n_choices = neg_coref_nids[0].shape[0] + 1
    h_dim = instance_embs.shape[-1]
    all_inputs = []
    for i in range(batch_size):
        start = int(sum(n_instances[:i]))
        end = start + int(n_instances[i])
        ne = _ref_merge(instance_embs[start:end], nid2rows[i])
        ctx_len = coref_nids[i].shape[0] - 1
        context = jnp.broadcast_to(coref_nids[i][:-1].reshape(1, -1),
                                   (n_choices, ctx_len))
        choices = jnp.concatenate(
            (coref_nids[i][-1].reshape(-1), neg_coref_nids[i]), axis=0
        ).reshape(-1, 1)
        idx = jnp.concatenate((context, choices), axis=1)
        all_inputs.append(jnp.take(ne, idx, axis=0))
    all_inputs = jnp.stack(all_inputs, axis=0)
    n_steps = all_inputs.shape[-2]
    batched = all_inputs.reshape(-1, n_steps, h_dim)
    rnn_out = _ref_lstm(batched, params['w_ih'], params['w_hh'],
                        params['b_ih'], params['b_hh'])
    if mode == 'embeddings':
        return rnn_out
    h = jnp.concatenate((rnn_out[:, -2, :], rnn_out[:, -1, :]), axis=1)
    scores = _ref_score(h, params['out_w'], params['out_b'])
    ys = jnp.zeros(scores.shape, jnp.float32).at[::n_choices].set(1.0)
    return scores, ys


# ---------------------------------------------------------------------------
if __name__ == "__main__":
    key = jax.random.PRNGKey(0)
    h_dim = 32
    n_negs = 4
    n_choices = n_negs + 1
    batch_size = 2
    num_nodes = 6
    coref_len = 4                       # n_steps = 4
    n_instances = [7, 7]

    kp, ke, kc, kn = jax.random.split(key, 4)
    params = init_params(kp, h_dim)
    prepped = prepare_params(params, h_dim)          # one-time weight prep

    total = sum(n_instances)
    instance_embs = jax.random.normal(ke, (total, h_dim), jnp.float32)

    nid2rows = []
    for i in range(batch_size):
        base = jnp.arange(num_nodes, dtype=jnp.int32).reshape(-1, 1)
        second = jnp.where((base % 2) == 0, base + 1, -1)          # -1 padding
        nid2rows.append(jnp.concatenate([base, second], axis=1))   # (6, 2)

    coref_nids = [
        jax.random.randint(jax.random.fold_in(kc, i), (coref_len,), 0,
                           num_nodes).astype(jnp.int32)
        for i in range(batch_size)
    ]
    neg_coref_nids = [
        jax.random.randint(jax.random.fold_in(kn, i), (n_negs,), 0,
                           num_nodes).astype(jnp.int32)
        for i in range(batch_size)
    ]

    # mode='embeddings' (default of the PyTorch forward)
    rnn_out = bert_event_lstm_forward(prepped, instance_embs, nid2rows,
                                      coref_nids, neg_coref_nids, n_instances,
                                      mode='embeddings')
    rnn_out = jax.block_until_ready(rnn_out)
    assert rnn_out.shape == (batch_size * n_choices, coref_len, h_dim)

    # mode='scores' (fused scoring head)
    scores, ys = bert_event_lstm_forward(prepped, instance_embs, nid2rows,
                                         coref_nids, neg_coref_nids,
                                         n_instances, mode='scores')
    scores = jax.block_until_ready(scores)

    # correctness vs pure-JAX f32 reference (bf16 MXU operands -> looser tols)
    ref_out = reference_forward(params, instance_embs, nid2rows, coref_nids,
                                neg_coref_nids, n_instances, mode='embeddings')
    ref_scores, ref_ys = reference_forward(params, instance_embs, nid2rows,
                                           coref_nids, neg_coref_nids,
                                           n_instances, mode='scores')
    assert jnp.allclose(rnn_out, ref_out, rtol=3e-2, atol=3e-2)
    assert jnp.allclose(scores, ref_scores, rtol=3e-2, atol=3e-2)
    assert jnp.array_equal(ys, ref_ys)

    print("KERNEL_OK")
</pallas_src>

<mosaic_0001>
module attributes {stable_mosaic.version = 11 : i64} {
  func.func @_merge_kernel(%arg0: i32, %arg1: memref<16x2xi32, #tpu.memory_space<vmem>>, %arg2: memref<128x128xbf16, #tpu.memory_space<vmem>>, %arg3: memref<16x128xf32, #tpu.memory_space<vmem>>) attributes {dimension_semantics = [#tpu.dimension_semantics<parallel>], iteration_bounds = array<i64: 1>, scalar_prefetch = 0 : i64, scratch_operands = 0 : i64, tpu.core_type = #tpu.core_type<tc>, window_params = [{transform_indices = @transform_0, window_bounds = array<i64: 16, 2>}, {pipeline_mode = #tpu.pipeline_mode<synchronous>, transform_indices = @transform_1, window_bounds = array<i64: 128, 128>}, {transform_indices = @transform_2, window_bounds = array<i64: 16, 128>}]} {
    %c0 = arith.constant 0 : index
    %c0_0 = arith.constant 0 : index
    %0 = vector.load %arg1[%c0, %c0_0] : memref<16x2xi32, #tpu.memory_space<vmem>>, vector<16x2xi32>
    %1 = tpu.iota {dimensions = array<i32: 1>} : vector<16x128xi32>
    %cst = arith.constant 0.000000e+00 : f32
    %2 = vector.broadcast %cst : f32 to vector<16x128xf32>
    %cst_1 = arith.constant 0.000000e+00 : f32
    %3 = vector.broadcast %cst_1 : f32 to vector<16x1xf32>
    %4 = vector.extract_strided_slice %0 {offsets = [0, 0], sizes = [16, 1], strides = [1, 1]} : vector<16x2xi32> to vector<16x1xi32>
    %c0_i32 = arith.constant 0 : i32
    %5 = vector.broadcast %c0_i32 : i32 to vector<16x1xi32>
    %6 = arith.cmpi sge, %4, %5 : vector<16x1xi32>
    %7 = vector.broadcast %4 : vector<16x1xi32> to vector<16x128xi32>
    %8 = arith.cmpi eq, %1, %7 : vector<16x128xi32>
    %9 = vector.broadcast %6 : vector<16x1xi1> to vector<16x128xi1>
    %10 = arith.andi %8, %9 : vector<16x128xi1>
    %cst_2 = arith.constant 1.000000e+00 : f32
    %cst_3 = arith.constant 0.000000e+00 : f32
    %11 = vector.broadcast %cst_2 : f32 to vector<16x128xf32>
    %12 = vector.broadcast %cst_3 : f32 to vector<16x128xf32>
    %13 = arith.select %10, %11, %12 : vector<16x128xi1>, vector<16x128xf32>
    %14 = arith.addf %2, %13 : vector<16x128xf32>
    %15 = arith.extui %6 : vector<16x1xi1> to vector<16x1xi32>
    %16 = arith.sitofp %15 : vector<16x1xi32> to vector<16x1xf32>
    %17 = arith.addf %3, %16 : vector<16x1xf32>
    %18 = vector.extract_strided_slice %0 {offsets = [0, 1], sizes = [16, 1], strides = [1, 1]} : vector<16x2xi32> to vector<16x1xi32>
    %c0_i32_4 = arith.constant 0 : i32
    %19 = vector.broadcast %c0_i32_4 : i32 to vector<16x1xi32>
    %20 = arith.cmpi sge, %18, %19 : vector<16x1xi32>
    %21 = vector.broadcast %18 : vector<16x1xi32> to vector<16x128xi32>
    %22 = arith.cmpi eq, %1, %21 : vector<16x128xi32>
    %23 = vector.broadcast %20 : vector<16x1xi1> to vector<16x128xi1>
    %24 = arith.andi %22, %23 : vector<16x128xi1>
    %cst_5 = arith.constant 1.000000e+00 : f32
    %cst_6 = arith.constant 0.000000e+00 : f32
    %25 = vector.broadcast %cst_5 : f32 to vector<16x128xf32>
    %26 = vector.broadcast %cst_6 : f32 to vector<16x128xf32>
    %27 = arith.select %24, %25, %26 : vector<16x128xi1>, vector<16x128xf32>
    %28 = arith.addf %14, %27 : vector<16x128xf32>
    %29 = arith.extui %20 : vector<16x1xi1> to vector<16x1xi32>
    %30 = arith.sitofp %29 : vector<16x1xi32> to vector<16x1xf32>
    %31 = arith.addf %17, %30 : vector<16x1xf32>
    %32 = arith.truncf %28 : vector<16x128xf32> to vector<16x128xbf16>
    %c0_7 = arith.constant 0 : index
    %c0_8 = arith.constant 0 : index
    %33 = vector.load %arg2[%c0_7, %c0_8] : memref<128x128xbf16, #tpu.memory_space<vmem>>, vector<128x128xbf16>
    %cst_9 = arith.constant dense<0.000000e+00> : vector<16x128xf32>
    %34 = tpu.matmul %32, %33, %cst_9 {dimension_numbers = #tpu.dot_dimension_numbers<[1], [0], [0], [1], [0, 0, 1, 1], [], []>} : vector<16x128xbf16>, vector<128x128xbf16>, vector<16x128xf32> -> vector<16x128xf32>
    %cst_10 = arith.constant 1.000000e+00 : f32
    %35 = vector.broadcast %cst_10 : f32 to vector<16x1xf32>
    %36 = arith.maximumf %31, %35 : vector<16x1xf32>
    %37 = vector.broadcast %36 : vector<16x1xf32> to vector<16x128xf32>
    %38 = arith.divf %34, %37 : vector<16x128xf32>
    %c0_11 = arith.constant 0 : index
    %c0_12 = arith.constant 0 : index
    %39 = vector.load %arg3[%c0_11, %c0_12] : memref<16x128xf32, #tpu.memory_space<vmem>>, vector<16x128xf32>
    tpu.vector_store %arg3[%c0_11, %c0_12], %38 {strides = array<i32>} : memref<16x128xf32, #tpu.memory_space<vmem>>, vector<16x128xf32>,
    return
  }
  func.func @transform_0(%arg0: i32) -> (i32, i32) {
    %c0_i32 = arith.constant 0 : i32
    %c0_i32_0 = arith.constant 0 : i32
    return %arg0, %c0_i32 : i32, i32
  }
  func.func @transform_1(%arg0: i32) -> (i32, i32) {
    %c0_i32 = arith.constant 0 : i32
    %c0_i32_0 = arith.constant 0 : i32
    %c0_i32_1 = arith.constant 0 : i32
    return %c0_i32, %c0_i32_0 : i32, i32
  }
  func.func @transform_2(%arg0: i32) -> (i32, i32) {
    %c0_i32 = arith.constant 0 : i32
    %c0_i32_0 = arith.constant 0 : i32
    return %arg0, %c0_i32 : i32, i32
  }
}

module attributes {stable_mosaic.version = 11 : i64} {
  func.func @_merge_kernel(%arg0: i32, %arg1: memref<16x2xi32, #tpu.memory_space<vmem>>, %arg2: memref<128x128xbf16, #tpu.memory_space<vmem>>, %arg3: memref<16x128xf32, #tpu.memory_space<vmem>>) attributes {dimension_semantics = [#tpu.dimension_semantics<parallel>], iteration_bounds = array<i64: 1>, scalar_prefetch = 0 : i64, scratch_operands = 0 : i64, tpu.core_type = #tpu.core_type<tc>, window_params = [{transform_indices = @transform_0, window_bounds = array<i64: 16, 2>}, {pipeline_mode = #tpu.pipeline_mode<synchronous>, transform_indices = @transform_1, window_bounds = array<i64: 128, 128>}, {transform_indices = @transform_2, window_bounds = array<i64: 16, 128>}]} {
    %c0 = arith.constant 0 : index
    %c0_0 = arith.constant 0 : index
    %0 = vector.load %arg1[%c0, %c0_0] : memref<16x2xi32, #tpu.memory_space<vmem>>, vector<16x2xi32>
    %1 = tpu.iota {dimensions = array<i32: 1>} : vector<16x128xi32>
    %cst = arith.constant 0.000000e+00 : f32
    %2 = vector.broadcast %cst : f32 to vector<16x128xf32>
    %cst_1 = arith.constant 0.000000e+00 : f32
    %3 = vector.broadcast %cst_1 : f32 to vector<16x1xf32>
    %4 = vector.extract_strided_slice %0 {offsets = [0, 0], sizes = [16, 1], strides = [1, 1]} : vector<16x2xi32> to vector<16x1xi32>
    %c0_i32 = arith.constant 0 : i32
    %5 = vector.broadcast %c0_i32 : i32 to vector<16x1xi32>
    %6 = arith.cmpi sge, %4, %5 : vector<16x1xi32>
    %7 = vector.broadcast %4 : vector<16x1xi32> to vector<16x128xi32>
    %8 = arith.cmpi eq, %1, %7 : vector<16x128xi32>
    %9 = vector.broadcast %6 : vector<16x1xi1> to vector<16x128xi1>
    %10 = arith.andi %8, %9 : vector<16x128xi1>
    %cst_2 = arith.constant 1.000000e+00 : f32
    %cst_3 = arith.constant 0.000000e+00 : f32
    %11 = vector.broadcast %cst_2 : f32 to vector<16x128xf32>
    %12 = vector.broadcast %cst_3 : f32 to vector<16x128xf32>
    %13 = arith.select %10, %11, %12 : vector<16x128xi1>, vector<16x128xf32>
    %14 = arith.addf %2, %13 : vector<16x128xf32>
    %15 = arith.extui %6 : vector<16x1xi1> to vector<16x1xi32>
    %16 = arith.sitofp %15 : vector<16x1xi32> to vector<16x1xf32>
    %17 = arith.addf %3, %16 : vector<16x1xf32>
    %18 = vector.extract_strided_slice %0 {offsets = [0, 1], sizes = [16, 1], strides = [1, 1]} : vector<16x2xi32> to vector<16x1xi32>
    %c0_i32_4 = arith.constant 0 : i32
    %19 = vector.broadcast %c0_i32_4 : i32 to vector<16x1xi32>
    %20 = arith.cmpi sge, %18, %19 : vector<16x1xi32>
    %21 = vector.broadcast %18 : vector<16x1xi32> to vector<16x128xi32>
    %22 = arith.cmpi eq, %1, %21 : vector<16x128xi32>
    %23 = vector.broadcast %20 : vector<16x1xi1> to vector<16x128xi1>
    %24 = arith.andi %22, %23 : vector<16x128xi1>
    %cst_5 = arith.constant 1.000000e+00 : f32
    %cst_6 = arith.constant 0.000000e+00 : f32
    %25 = vector.broadcast %cst_5 : f32 to vector<16x128xf32>
    %26 = vector.broadcast %cst_6 : f32 to vector<16x128xf32>
    %27 = arith.select %24, %25, %26 : vector<16x128xi1>, vector<16x128xf32>
    %28 = arith.addf %14, %27 : vector<16x128xf32>
    %29 = arith.extui %20 : vector<16x1xi1> to vector<16x1xi32>
    %30 = arith.sitofp %29 : vector<16x1xi32> to vector<16x1xf32>
    %31 = arith.addf %17, %30 : vector<16x1xf32>
    %32 = arith.truncf %28 : vector<16x128xf32> to vector<16x128xbf16>
    %c0_7 = arith.constant 0 : index
    %c0_8 = arith.constant 0 : index
    %33 = vector.load %arg2[%c0_7, %c0_8] : memref<128x128xbf16, #tpu.memory_space<vmem>>, vector<128x128xbf16>
    %cst_9 = arith.constant dense<0.000000e+00> : vector<16x128xf32>
    %34 = tpu.matmul %32, %33, %cst_9 {dimension_numbers = #tpu.dot_dimension_numbers<[1], [0], [0], [1], [0, 0, 1, 1], [], []>} : vector<16x128xbf16>, vector<128x128xbf16>, vector<16x128xf32> -> vector<16x128xf32>
    %cst_10 = arith.constant 1.000000e+00 : f32
    %35 = vector.broadcast %cst_10 : f32 to vector<16x1xf32>
    %36 = arith.maximumf %31, %35 : vector<16x1xf32>
    %37 = vector.broadcast %36 : vector<16x1xf32> to vector<16x128xf32>
    %38 = arith.divf %34, %37 : vector<16x128xf32>
    %c0_11 = arith.constant 0 : index
    %c0_12 = arith.constant 0 : index
    %39 = vector.load %arg3[%c0_11, %c0_12] : memref<16x128xf32, #tpu.memory_space<vmem>>, vector<16x128xf32>
    tpu.vector_store %arg3[%c0_11, %c0_12], %38 {strides = array<i32>} : memref<16x128xf32, #tpu.memory_space<vmem>>, vector<16x128xf32>,
    return
  }
  func.func @transform_0(%arg0: i32) -> (i32, i32) {
    %c0_i32 = arith.constant 0 : i32
    %c0_i32_0 = arith.constant 0 : i32
    return %arg0, %c0_i32 : i32, i32
  }
  func.func @transform_1(%arg0: i32) -> (i32, i32) {
    %c0_i32 = arith.constant 0 : i32
    %c0_i32_0 = arith.constant 0 : i32
    %c0_i32_1 = arith.constant 0 : i32
    return %c0_i32, %c0_i32_0 : i32, i32
  }
  func.func @transform_2(%arg0: i32) -> (i32, i32) {
    %c0_i32 = arith.constant 0 : i32
    %c0_i32_0 = arith.constant 0 : i32
    return %arg0, %c0_i32 : i32, i32
  }
}

</mosaic_0001>

<bundles_post_ra>
// kernel: tpu_custom_call.1
= control target key start
LH: loop header
LB: loop body
LE: loop exit
PB: predicated region body
PF: predicated region fallthrough
CT: control target
= control target key end

     0   :  { %7 = vsyncpa [#allocation3], 0  ;;  %s409_s0 = inlined_call_operand.vmem [shape: s32[16,2], index: 0, kind: input, shape index: {}]   ;;  %s410_s1 = inlined_call_operand.hbm [shape: bf16[128,128], index: 1, kind: input, shape index: {}]   ;;  %s411_s2 = inlined_call_operand.hbm [shape: f32[16,128], index: 2, kind: output, shape index: {}]  }
   0x1   :  { %8 = vsyncpa [#allocation4], 0  ;;  %s354_s9 = smov [#allocation2]  }
   0x2   :  { %s16_s10 = sshll.u32 %s354_s9, 4  ;;  %s17_s10 = int_to_ptr.vmem [resolvable:$true] %s16_s10 }
   0x3   :  { %s318_s11 = scalar_lea.vmem %s17_s10, 1024  ;;  %p323_p1 = scmp.lt.s32.totalorder %s17_s10, %s17_s10 }
   0x4   :  { %p319_p0 = scmp.ne.s32.totalorder %s17_s10, %s318_s11  ;;  %p324_p2 = scmp.lt.s32.totalorder %s318_s11, %s318_s11 }
   0x6   :  { %p325_p3 = por %p324_p2, %p323_p1 }
   0x8   :  { %p326_p4 = pnand %p325_p3, %p319_p0 }
   0xa   :  { %329 = shalt.err (!%p326_p4)
}
   0xb   :  { %s355_s12 = smov 64   ;;  %s356_s13 = smov 4  }
   0xc   :  { %22 = dma.hbm_to_vmem [thread:$0]  %s410_s1, 1024, %s17_s10, [#allocation3], %s355_s12, %s355_s12, %s356_s13  }
   0xd   :  { %350 = dma.done.wait [#allocation3], 1024  }
   0xe   :  { %351 = vsyncadd [#allocation3], 4294966272  ;;  %v357_v0 = vmov 1   ;;  %v358_v1 = vmov 0   ;;  %v359_v2 = vmov 0.0   ;;  %v28_v3 = vld [vmem:[%s409_s0 + $0x8] sm:$0xff]  ;;  %v29_v21 = vlaneseq }
   0xf   :  { %286 = vset.pattern.permute.xlu1 %v357_v0  ;;  %284 = vset.pattern.permute.xlu0 %v358_v1  ;;  %v27_v4 = vld [vmem:[%s409_s0] sm:$0xff]  ;;  %v296_v5 = vld [vmem:[#allocation2 + $0x38] sm:$0xff]   ;;  %v297_v7 = vld [vmem:[#allocation2 + $0x30] sm:$0xff]   ;;  %vm32_vm1 = vcmp.ge.s32.totalorder %v28_v3, 0  ;;  %vm360_vm2 = vmmov 0   ;;  %s361_s0 = smov 127  }
  0x10   :  { %253 = vmatprep.subr.bf16.mxu0 %v359_v2  ;;  %65 = vperm.xlu1 %286, %v28_v3   ;;  %vm31_vm0 = vcmp.ge.s32.totalorder %v27_v4, 0  ;;  %v42_v8 = vsel %vm32_vm1, 1, %v358_v1  ;;  %v298_v9 = vld [vmem:[#allocation2 + $0x28] sm:$0xff]   ;;  %v299_v10 = vld [vmem:[#allocation2 + $0x20] sm:$0xff]   ;;  %v235_v12 = vsel %vm32_vm1, 1.0, %v359_v2  ;;  %v300_v14 = vld [vmem:[#allocation2 + $0x18] sm:$0xff]  }
  0x11   :  { %34 = vperm.xlu0 %284, %v27_v4   ;;  %v41_v6 = vsel %vm31_vm0, 1, %v358_v1  ;;  %254 = vmatpush3.bf16.msra.mxu0 %v296_v5  ;;  %v234_v11 = vsel %vm31_vm0, 1.0, %v359_v2  ;;  %v301_v15 = vld [vmem:[#allocation2 + $0x10] sm:$0xff]   ;;  %v302_v16 = vld [vmem:[#allocation2 + $0x8] sm:$0xff]   ;;  %v303_v17 = vld [vmem:[#allocation2] sm:$0xff]   ;;  %v30_v23 = vand.u32 127, %v29_v21 }
  0x12   :  { %255 = vmatprep.subr.bf16.mxu0 %v359_v2  ;;  %v289_v13 = vpack.i.bf16 %v235_v12, %v234_v11  ;;  %269 = vmatprep.mubr.msk.bf16.mxu0 %vm360_vm2, %v359_v2  ;;  %s362_s1 = smov [#allocation5]  }
  0x13   :  { %s222_s20 = sshll.u32 %s362_s1, 4  ;;  %s223_s20 = int_to_ptr.vmem [resolvable:$true] %s222_s20 }
  0x14   :  { %287 = vset.pattern.permute.xlu1 %v358_v1  ;;  %s330_s21 = scalar_lea.vmem %s223_s20, 256  ;;  %p335_p6 = scmp.lt.s32.totalorder %s223_s20, %s223_s20 }
  0x15   :  { %37 = vperm.xlu0 %284, %v28_v3   ;;  %44 = vperm.xlu1 %287, %v41_v6   ;;  %p331_p5 = scmp.ne.s32.totalorder %s223_s20, %s330_s21  ;;  %p336_p7 = scmp.lt.s32.totalorder %s330_s21, %s330_s21 }
  0x16   :  { %256 = vmatpush3.bf16.msra.mxu0 %v297_v7 }
  0x17   :  { %257 = vmatprep.subr.bf16.mxu0 %v359_v2  ;;  %p337_p8 = por %p336_p7, %p335_p6 }
  0x19   :  { %285 = vset.pattern.permute.xlu0 %v357_v0  ;;  %47 = vperm.xlu1 %287, %v42_v8   ;;  %p338_p9 = pnand %p337_p8, %p331_p5 }
  0x1a   :  { %62 = vperm.xlu0 %285, %v27_v4   ;;  %258 = vmatpush3.bf16.msra.mxu0 %v298_v9 }
  0x1b   :  { %259 = vmatprep.subr.bf16.mxu0 %v359_v2 }
  0x1d   :  { %288 = vset.pattern.permute.xlu1 %v357_v0 }
  0x1e   :  { %73 = vperm.xlu0 %285, %v42_v8   ;;  %70 = vperm.xlu1 %288, %v41_v6  }
  0x1f   :  { %260 = vmatpush3.bf16.msra.mxu0 %v299_v10 }
  0x20   :  { %261 = vmatprep.subr.bf16.mxu0 %v359_v2 }
  0x22   :  { %294 = vset.pattern.permute.xlu0 %v358_v1  ;;  %290 = vrot.lane.b32.xlu1 %v289_v13, %s361_s0 }
  0x23   :  { %262 = vmatpush3.bf16.msra.mxu0 %v300_v14  ;;  %295 = vset.pattern.permute.xlu1 %v358_v1 }
  0x24   :  { %263 = vmatprep.subr.bf16.mxu0 %v359_v2 }
  0x27   :  { %264 = vmatpush3.bf16.msra.mxu0 %v301_v15 }
  0x28   :  { %265 = vmatprep.subr.bf16.mxu0 %v359_v2 }
  0x2b   :  { %266 = vmatpush3.bf16.msra.mxu0 %v302_v16 }
  0x2c   :  { %267 = vmatprep.subr.bf16.mxu0 %v359_v2 }
  0x2f   :  { %268 = vmatpush3.bf16.msra.mxu0 %v303_v17 }
  0x8b   :  { %v66_v18 = vpop.permute.xlu1 %65 }
  0x8c   :  { %v35_v19 = vpop.permute.xlu0 %34  ;;  %vm68_vm8 = vcmp.eq.s32.totalorder %v30_v23, %v66_v18 }
  0x8d   :  { %vm39_vm6 = vcmp.eq.s32.totalorder %v30_v23, %v35_v19 }
  0x90   :  { %v38_v20 = vpop.permute.xlu0 %37  ;;  %v45_v22 = vpop.permute.xlu1 %44 }
  0x91   :  { %vm49_vm4 = vcmp.eq.s32.totalorder %v45_v22, 1  ;;  %vm40_vm5 = vcmp.eq.s32.totalorder %v30_v23, %v38_v20 }
  0x92   :  { %vm51_vm9 = vmand %vm39_vm6, %vm49_vm4 }
  0x93   :  { %v53_v30 = vsel %vm51_vm9, 1.0, %v359_v2 }
  0x94   :  { %v48_v25 = vpop.permute.xlu1 %47 }
  0x95   :  { %v63_v24 = vpop.permute.xlu0 %62  ;;  %vm50_vm3 = vcmp.eq.s32.totalorder %v48_v25, 1 }
  0x96   :  { %vm52_vm7 = vmand %vm40_vm5, %vm50_vm3  ;;  %vm67_vm11 = vcmp.eq.s32.totalorder %v30_v23, %v63_v24 }
  0x97   :  { %v54_v28 = vsel %vm52_vm7, 1.0, %v359_v2 }
  0x99   :  { %v74_v26 = vpop.permute.xlu0 %73  ;;  %v71_v27 = vpop.permute.xlu1 %70 }
  0x9a   :  { %vm76_vm10 = vcmp.eq.s32.totalorder %v74_v26, 1  ;;  %vm75_vm13 = vcmp.eq.s32.totalorder %v71_v27, 1 }
  0x9b   :  { %vm78_vm12 = vmand %vm68_vm8, %vm76_vm10 }
  0x9c   :  { %v80_v29 = vsel %vm78_vm12, 1.0, %v359_v2  ;;  %vm77_vm14 = vmand %vm67_vm11, %vm75_vm13 }
  0x9d   :  { %v82_v31 = vadd.f32 %v80_v29, %v54_v28  ;;  %v79_v32 = vsel %vm77_vm14, 1.0, %v359_v2  ;;  %v291_v34 = vpop.permute.xlu1 %290 }
  0x9e   :  { %v81_v33 = vadd.f32 %v79_v32, %v53_v30  ;;  %v308_v36 = vadd.high.f32.bf16 %v235_v12, %v291_v34  ;;  %v309_v37 = vadd.low.f32.bf16 %v234_v11, %v291_v34 }
  0xa0   :  { %v93_v35 = vpack.c.bf16 %v82_v31, %v81_v33  ;;  %v199_v38 = vmax.f32 %v309_v37, 1.0  ;;  %v200_v39 = vmax.f32 %v308_v36, 1.0 }
  0xa2   :  { %270 = vmatmul.mubr.bf16.vlgmr.msra.gmra.mxu0 %v93_v35  ;;  %203 = vperm.xlu0 %294, %v199_v38  }
  0xa3   :  { %208 = vperm.xlu1 %295, %v200_v39  }
 0x11d   :  { %v204_v40 = vpop.permute.xlu0 %203 }
 0x11e   :  { %304 = vrcp.f32 %v204_v40  ;;  %v209_v41 = vpop.permute.xlu1 %208 }
 0x11f   :  { %306 = vrcp.f32 %v209_v41 }
 0x12b   :  { %v305_v42 = vpop.eup %304 }
 0x12c   :  { %v307_v45 = vpop.eup %306 }
 0x162   :  { %v192_v43 = vpop.f32.mrf.mxu0 }
 0x163   :  { %v212_v44 = vmul.f32 %v305_v42, %v192_v43 }
 0x164   :  { %v271_v46 = vpop.f32.mrf.mxu0 }
 0x165   :  { %215 = vst [vmem:[#allocation5] sm:$0xff] %v212_v44 }
 0x166   :  { %v195_v47 = vpop.f32.mrf.mxu0 }
 0x167   :  { %v214_v48 = vmul.f32 %v307_v45, %v195_v47 }
 0x168   :  { %v272_v49 = vpop.f32.mrf.mxu0 }
 0x169   :  { %216 = vst [vmem:[#allocation5 + $0x8] sm:$0xff] %v214_v48 }
 0x16a   :  { %341 = shalt.err (!%p338_p9)
}
 0x16b   :  { %s363_s22 = smov 128   ;;  %s364_s23 = smov 8  }
 0x16c   :  { %228 = dma.vmem_to_hbm [thread:$0]  %s223_s20, 256, %s411_s2, [#allocation4], %s363_s22, %s363_s22, %s364_s23  }
 0x16d   :  { %352 = dma.done.wait [#allocation4], 256  }
 0x16e   :  { %353 = vsyncadd [#allocation4], 4294967040 }
 0x16f   :  { %232 = vsyncpa [#allocation3], 1 }
 0x170   :  { %233 = vsyncpa [#allocation4], 1 }

// kernel: tpu_custom_call.1
= control target key start
LH: loop header
LB: loop body
LE: loop exit
PB: predicated region body
PF: predicated region fallthrough
CT: control target
= control target key end

     0   :  { %7 = vsyncpa [#allocation3], 0  ;;  %s409_s0 = inlined_call_operand.vmem [shape: s32[16,2], index: 0, kind: input, shape index: {}]   ;;  %s410_s1 = inlined_call_operand.hbm [shape: bf16[128,128], index: 1, kind: input, shape index: {}]   ;;  %s411_s2 = inlined_call_operand.hbm [shape: f32[16,128], index: 2, kind: output, shape index: {}]  }
   0x1   :  { %8 = vsyncpa [#allocation4], 0  ;;  %s354_s9 = smov [#allocation2]  }
   0x2   :  { %s16_s10 = sshll.u32 %s354_s9, 4  ;;  %s17_s10 = int_to_ptr.vmem [resolvable:$true] %s16_s10 }
   0x3   :  { %s318_s11 = scalar_lea.vmem %s17_s10, 1024  ;;  %p323_p1 = scmp.lt.s32.totalorder %s17_s10, %s17_s10 }
   0x4   :  { %p319_p0 = scmp.ne.s32.totalorder %s17_s10, %s318_s11  ;;  %p324_p2 = scmp.lt.s32.totalorder %s318_s11, %s318_s11 }
   0x6   :  { %p325_p3 = por %p324_p2, %p323_p1 }
   0x8   :  { %p326_p4 = pnand %p325_p3, %p319_p0 }
   0xa   :  { %329 = shalt.err (!%p326_p4)
}
   0xb   :  { %s355_s12 = smov 64   ;;  %s356_s13 = smov 4  }
   0xc   :  { %22 = dma.hbm_to_vmem [thread:$0]  %s410_s1, 1024, %s17_s10, [#allocation3], %s355_s12, %s355_s12, %s356_s13  }
   0xd   :  { %350 = dma.done.wait [#allocation3], 1024  }
   0xe   :  { %351 = vsyncadd [#allocation3], 4294966272  ;;  %v357_v0 = vmov 1   ;;  %v358_v1 = vmov 0   ;;  %v359_v2 = vmov 0.0   ;;  %v28_v3 = vld [vmem:[%s409_s0 + $0x8] sm:$0xff]  ;;  %v29_v21 = vlaneseq }
   0xf   :  { %286 = vset.pattern.permute.xlu1 %v357_v0  ;;  %284 = vset.pattern.permute.xlu0 %v358_v1  ;;  %v27_v4 = vld [vmem:[%s409_s0] sm:$0xff]  ;;  %v296_v5 = vld [vmem:[#allocation2 + $0x38] sm:$0xff]   ;;  %v297_v7 = vld [vmem:[#allocation2 + $0x30] sm:$0xff]   ;;  %vm32_vm1 = vcmp.ge.s32.totalorder %v28_v3, 0  ;;  %vm360_vm2 = vmmov 0   ;;  %s361_s0 = smov 127  }
  0x10   :  { %253 = vmatprep.subr.bf16.mxu0 %v359_v2  ;;  %65 = vperm.xlu1 %286, %v28_v3   ;;  %vm31_vm0 = vcmp.ge.s32.totalorder %v27_v4, 0  ;;  %v42_v8 = vsel %vm32_vm1, 1, %v358_v1  ;;  %v298_v9 = vld [vmem:[#allocation2 + $0x28] sm:$0xff]   ;;  %v299_v10 = vld [vmem:[#allocation2 + $0x20] sm:$0xff]   ;;  %v235_v12 = vsel %vm32_vm1, 1.0, %v359_v2  ;;  %v300_v14 = vld [vmem:[#allocation2 + $0x18] sm:$0xff]  }
  0x11   :  { %34 = vperm.xlu0 %284, %v27_v4   ;;  %v41_v6 = vsel %vm31_vm0, 1, %v358_v1  ;;  %254 = vmatpush3.bf16.msra.mxu0 %v296_v5  ;;  %v234_v11 = vsel %vm31_vm0, 1.0, %v359_v2  ;;  %v301_v15 = vld [vmem:[#allocation2 + $0x10] sm:$0xff]   ;;  %v302_v16 = vld [vmem:[#allocation2 + $0x8] sm:$0xff]   ;;  %v303_v17 = vld [vmem:[#allocation2] sm:$0xff]   ;;  %v30_v23 = vand.u32 127, %v29_v21 }
  0x12   :  { %255 = vmatprep.subr.bf16.mxu0 %v359_v2  ;;  %v289_v13 = vpack.i.bf16 %v235_v12, %v234_v11  ;;  %269 = vmatprep.mubr.msk.bf16.mxu0 %vm360_vm2, %v359_v2  ;;  %s362_s1 = smov [#allocation5]  }
  0x13   :  { %s222_s20 = sshll.u32 %s362_s1, 4  ;;  %s223_s20 = int_to_ptr.vmem [resolvable:$true] %s222_s20 }
  0x14   :  { %287 = vset.pattern.permute.xlu1 %v358_v1  ;;  %s330_s21 = scalar_lea.vmem %s223_s20, 256  ;;  %p335_p6 = scmp.lt.s32.totalorder %s223_s20, %s223_s20 }
  0x15   :  { %37 = vperm.xlu0 %284, %v28_v3   ;;  %44 = vperm.xlu1 %287, %v41_v6   ;;  %p331_p5 = scmp.ne.s32.totalorder %s223_s20, %s330_s21  ;;  %p336_p7 = scmp.lt.s32.totalorder %s330_s21, %s330_s21 }
  0x16   :  { %256 = vmatpush3.bf16.msra.mxu0 %v297_v7 }
  0x17   :  { %257 = vmatprep.subr.bf16.mxu0 %v359_v2  ;;  %p337_p8 = por %p336_p7, %p335_p6 }
  0x19   :  { %285 = vset.pattern.permute.xlu0 %v357_v0  ;;  %47 = vperm.xlu1 %287, %v42_v8   ;;  %p338_p9 = pnand %p337_p8, %p331_p5 }
  0x1a   :  { %62 = vperm.xlu0 %285, %v27_v4   ;;  %258 = vmatpush3.bf16.msra.mxu0 %v298_v9 }
  0x1b   :  { %259 = vmatprep.subr.bf16.mxu0 %v359_v2 }
  0x1d   :  { %288 = vset.pattern.permute.xlu1 %v357_v0 }
  0x1e   :  { %73 = vperm.xlu0 %285, %v42_v8   ;;  %70 = vperm.xlu1 %288, %v41_v6  }
  0x1f   :  { %260 = vmatpush3.bf16.msra.mxu0 %v299_v10 }
  0x20   :  { %261 = vmatprep.subr.bf16.mxu0 %v359_v2 }
  0x22   :  { %294 = vset.pattern.permute.xlu0 %v358_v1  ;;  %290 = vrot.lane.b32.xlu1 %v289_v13, %s361_s0 }
  0x23   :  { %262 = vmatpush3.bf16.msra.mxu0 %v300_v14  ;;  %295 = vset.pattern.permute.xlu1 %v358_v1 }
  0x24   :  { %263 = vmatprep.subr.bf16.mxu0 %v359_v2 }
  0x27   :  { %264 = vmatpush3.bf16.msra.mxu0 %v301_v15 }
  0x28   :  { %265 = vmatprep.subr.bf16.mxu0 %v359_v2 }
  0x2b   :  { %266 = vmatpush3.bf16.msra.mxu0 %v302_v16 }
  0x2c   :  { %267 = vmatprep.subr.bf16.mxu0 %v359_v2 }
  0x2f   :  { %268 = vmatpush3.bf16.msra.mxu0 %v303_v17 }
  0x8b   :  { %v66_v18 = vpop.permute.xlu1 %65 }
  0x8c   :  { %v35_v19 = vpop.permute.xlu0 %34  ;;  %vm68_vm8 = vcmp.eq.s32.totalorder %v30_v23, %v66_v18 }
  0x8d   :  { %vm39_vm6 = vcmp.eq.s32.totalorder %v30_v23, %v35_v19 }
  0x90   :  { %v38_v20 = vpop.permute.xlu0 %37  ;;  %v45_v22 = vpop.permute.xlu1 %44 }
  0x91   :  { %vm49_vm4 = vcmp.eq.s32.totalorder %v45_v22, 1  ;;  %vm40_vm5 = vcmp.eq.s32.totalorder %v30_v23, %v38_v20 }
  0x92   :  { %vm51_vm9 = vmand %vm39_vm6, %vm49_vm4 }
  0x93   :  { %v53_v30 = vsel %vm51_vm9, 1.0, %v359_v2 }
  0x94   :  { %v48_v25 = vpop.permute.xlu1 %47 }
  0x95   :  { %v63_v24 = vpop.permute.xlu0 %62  ;;  %vm50_vm3 = vcmp.eq.s32.totalorder %v48_v25, 1 }
  0x96   :  { %vm52_vm7 = vmand %vm40_vm5, %vm50_vm3  ;;  %vm67_vm11 = vcmp.eq.s32.totalorder %v30_v23, %v63_v24 }
  0x97   :  { %v54_v28 = vsel %vm52_vm7, 1.0, %v359_v2 }
  0x99   :  { %v74_v26 = vpop.permute.xlu0 %73  ;;  %v71_v27 = vpop.permute.xlu1 %70 }
  0x9a   :  { %vm76_vm10 = vcmp.eq.s32.totalorder %v74_v26, 1  ;;  %vm75_vm13 = vcmp.eq.s32.totalorder %v71_v27, 1 }
  0x9b   :  { %vm78_vm12 = vmand %vm68_vm8, %vm76_vm10 }
  0x9c   :  { %v80_v29 = vsel %vm78_vm12, 1.0, %v359_v2  ;;  %vm77_vm14 = vmand %vm67_vm11, %vm75_vm13 }
  0x9d   :  { %v82_v31 = vadd.f32 %v80_v29, %v54_v28  ;;  %v79_v32 = vsel %vm77_vm14, 1.0, %v359_v2  ;;  %v291_v34 = vpop.permute.xlu1 %290 }
  0x9e   :  { %v81_v33 = vadd.f32 %v79_v32, %v53_v30  ;;  %v308_v36 = vadd.high.f32.bf16 %v235_v12, %v291_v34  ;;  %v309_v37 = vadd.low.f32.bf16 %v234_v11, %v291_v34 }
  0xa0   :  { %v93_v35 = vpack.c.bf16 %v82_v31, %v81_v33  ;;  %v199_v38 = vmax.f32 %v309_v37, 1.0  ;;  %v200_v39 = vmax.f32 %v308_v36, 1.0 }
  0xa2   :  { %270 = vmatmul.mubr.bf16.vlgmr.msra.gmra.mxu0 %v93_v35  ;;  %203 = vperm.xlu0 %294, %v199_v38  }
  0xa3   :  { %208 = vperm.xlu1 %295, %v200_v39  }
 0x11d   :  { %v204_v40 = vpop.permute.xlu0 %203 }
 0x11e   :  { %304 = vrcp.f32 %v204_v40  ;;  %v209_v41 = vpop.permute.xlu1 %208 }
 0x11f   :  { %306 = vrcp.f32 %v209_v41 }
 0x12b   :  { %v305_v42 = vpop.eup %304 }
 0x12c   :  { %v307_v45 = vpop.eup %306 }
 0x162   :  { %v192_v43 = vpop.f32.mrf.mxu0 }
 0x163   :  { %v212_v44 = vmul.f32 %v305_v42, %v192_v43 }
 0x164   :  { %v271_v46 = vpop.f32.mrf.mxu0 }
 0x165   :  { %215 = vst [vmem:[#allocation5] sm:$0xff] %v212_v44 }
 0x166   :  { %v195_v47 = vpop.f32.mrf.mxu0 }
 0x167   :  { %v214_v48 = vmul.f32 %v307_v45, %v195_v47 }
 0x168   :  { %v272_v49 = vpop.f32.mrf.mxu0 }
 0x169   :  { %216 = vst [vmem:[#allocation5 + $0x8] sm:$0xff] %v214_v48 }
 0x16a   :  { %341 = shalt.err (!%p338_p9)
}
 0x16b   :  { %s363_s22 = smov 128   ;;  %s364_s23 = smov 8  }
 0x16c   :  { %228 = dma.vmem_to_hbm [thread:$0]  %s223_s20, 256, %s411_s2, [#allocation4], %s363_s22, %s363_s22, %s364_s23  }
 0x16d   :  { %352 = dma.done.wait [#allocation4], 256  }
 0x16e   :  { %353 = vsyncadd [#allocation4], 4294967040 }
 0x16f   :  { %232 = vsyncpa [#allocation3], 1 }
 0x170   :  { %233 = vsyncpa [#allocation4], 1 }

</bundles_post_ra>
